<compile_context>
chip_gen: v6e
topology: v6e:2x2x1
jax: 0.10.0
libtpu: 0.0.40
codegen_flags: <defaults>
</compile_context>

<pallas_src>
import functools

import jax
import jax.numpy as jnp
from jax.experimental import pallas as pl
from jax.experimental.pallas import tpu as pltpu


def _round_up(v: int, m: int) -> int:
    return (v + m - 1) // m * m


def _tpu_defaults():
    """Per-generation token-block size and scoped-VMEM limit (perf review)."""
    try:
        kind = jax.devices()[0].device_kind.lower()
    except Exception:
        kind = ""
    if "v7" in kind:                      # 64 MiB VMEM per TensorCore, 2 TCs
        return 512, 48 * 1024 * 1024
    if "v6" in kind:                      # 128 MiB VMEM; wants big tiles
        return 768, 100 * 1024 * 1024
    if "v5p" in kind:
        return 512, 96 * 1024 * 1024
    if "v5" in kind:                      # v5e / v5 lite (16 MiB default scoped)
        return 256, 96 * 1024 * 1024
    return 512, 48 * 1024 * 1024          # unknown: conservative


# --------------------- Kernel 1: gate scores (bf16 MXU, f32 acc) ------------
def _gate_kernel(x_ref, wg_ref, s_ref):
    logits = jnp.dot(x_ref[...], wg_ref[...], preferred_element_type=jnp.float32)
    s_ref[...] = 1.0 / (1.0 + jnp.exp(-logits))


def _gate_scores(x_bf, gate_wt, token_block, vmem_cap):
    """scores = sigmoid(x @ gate_wt). Pallas for large E, XLA for small E."""
    n, dim = x_bf.shape
    n_experts = gate_wt.shape[1]
    if n_experts < 128 or n < 128:
        # Small gate: a plain XLA dot fuses with top_k and avoids padding E
        # up to 128 lanes (perf review, minor item).
        logits = jnp.dot(x_bf, gate_wt.astype(jnp.bfloat16),
                         preferred_element_type=jnp.float32)
        return jax.nn.sigmoid(logits)

    dim_p = _round_up(dim, 128)
    e_p = _round_up(n_experts, 128)
    gm = min(token_block, _round_up(n, 16))
    n_pad = _round_up(n, gm)
    x_pad = jnp.zeros((n_pad, dim_p), jnp.bfloat16).at[:n, :dim].set(x_bf)
    wg = jnp.zeros((dim_p, e_p), jnp.bfloat16).at[:dim, :n_experts].set(
        gate_wt.astype(jnp.bfloat16))
    scores_pad = pl.pallas_call(
        _gate_kernel,
        out_shape=jax.ShapeDtypeStruct((n_pad, e_p), jnp.float32),
        grid=(n_pad // gm,),
        in_specs=[pl.BlockSpec((gm, dim_p), lambda t: (t, 0)),
                  pl.BlockSpec((dim_p, e_p), lambda t: (0, 0))],
        out_specs=pl.BlockSpec((gm, e_p), lambda t: (t, 0)),
        compiler_params=pltpu.CompilerParams(
            dimension_semantics=("parallel",),
            vmem_limit_bytes=vmem_cap),
    )(x_pad, wg)
    return scores_pad[:n, :n_experts]


# --------------------- Kernel 2: grouped expert FFN -------------------------
def _gmm_kernel(block_expert_ref, block_valid_ref,
                x_ref, w1_ref, b1_ref, w2_ref, b2_ref, y_ref):
    del block_expert_ref          # consumed by the index_maps only
    i = pl.program_id(0)
    kc = pl.program_id(1)

    @pl.when(kc == 0)
    def _():
        y_ref[...] = jnp.zeros_like(y_ref)

    # Trailing all-padding blocks skip both MXU matmuls.  Their weight block
    # index is pinned to the last real block's expert, so no extra weight DMA
    # is issued either.
    @pl.when(block_valid_ref[i] != 0)
    def _():
        h = jnp.dot(x_ref[...], w1_ref[...], preferred_element_type=jnp.float32)
        h = jnp.maximum(h + b1_ref[...], 0.0)
        y_ref[...] += jnp.dot(h.astype(jnp.bfloat16), w2_ref[...],
                              preferred_element_type=jnp.float32)

    @pl.when(kc == pl.num_programs(1) - 1)
    def _():
        y_ref[...] += b2_ref[...]


def _vmem_need_bytes(bm, dim_p, tk):
    weights = 2 * (dim_p * tk * 2 + tk * dim_p * 2 + tk * 4 + dim_p * 4)
    acts = 2 * (bm * dim_p * 2)     # double-buffered bf16 x block
    outs = 2 * (bm * dim_p * 4)     # double-buffered f32 output block
    return weights + acts + outs


def _pick_tiles(bm, dim_p, inter_p, vmem_cap):
    """Largest inter-chunk (then token block) fitting the VMEM budget."""
    budget = int(vmem_cap * 0.85)
    m = inter_p // 128
    tk_cands = sorted({128 * d for d in range(1, m + 1) if m % d == 0},
                      reverse=True)
    while True:
        for tk in tk_cands:
            if _vmem_need_bytes(bm, dim_p, tk) <= budget:
                return bm, tk
        if bm <= 16:
            return bm, 128
        bm = max(16, _round_up(bm // 2, 16))


# --------------------- Params (nn.Linear-style, stored transposed) ----------
def init_moe_params(key, dim, n_experts, moe_inter_dim):
    kg, k1, kb1, k2, kb2 = jax.random.split(key, 5)
    gate_wt = jax.random.normal(kg, (n_experts, dim), jnp.float32).T        # (dim, E)
    w1t = 0.1 * jax.random.normal(k1, (n_experts, dim, moe_inter_dim), jnp.float32)
    b1 = 0.1 * jax.random.normal(kb1, (n_experts, 1, moe_inter_dim), jnp.float32)
    w2t = 0.1 * jax.random.normal(k2, (n_experts, moe_inter_dim, dim), jnp.float32)
    b2 = 0.1 * jax.random.normal(kb2, (n_experts, 1, dim), jnp.float32)
    return dict(gate_wt=gate_wt, w1t=w1t, b1=b1, w2t=w2t, b2=b2)


# --------------------- Forward ----------------------------------------------
@functools.partial(jax.jit, static_argnames=("n_activated_experts", "token_block"))
def moe_forward(x, params, n_activated_experts, route_scale=1.0, token_block=None):
    gate_wt = params["gate_wt"]            # (dim, E)
    w1t, b1 = params["w1t"], params["b1"]  # (E, dim, inter), (E, 1, inter)
    w2t, b2 = params["w2t"], params["b2"]  # (E, inter, dim), (E, 1, dim)
    dim, n_experts = gate_wt.shape
    inter = w1t.shape[2]
    k = n_activated_experts

    default_bm, vmem_cap = _tpu_defaults()
    bm = int(token_block) if token_block is not None else default_bm

    x2 = x.reshape(-1, dim).astype(jnp.float32)    # == x.view(-1, dim)
    n_tok = x2.shape[0]
    x_bf = x2.astype(jnp.bfloat16)                 # single shared bf16 copy

    # ---- Gate + top-k routing ----------------------------------------------
    scores = _gate_scores(x_bf, gate_wt, bm, vmem_cap)           # (N, E) f32
    top_vals, top_idx = jax.lax.top_k(scores, k)                 # (N, k)
    weights = top_vals / jnp.sum(top_vals, axis=-1, keepdims=True)
    weights = weights * route_scale

    # ---- Group routed (token, expert) assignments by expert ----------------
    nk = n_tok * k
    expert_flat = top_idx.reshape(-1).astype(jnp.int32)          # (Nk,)
    token_flat = (jnp.arange(nk, dtype=jnp.int32) // k)          # (Nk,)
    gw_flat = weights.reshape(-1)                                # (Nk,)

    order = jnp.argsort(expert_flat)                             # stable sort
    e_sorted = expert_flat[order]
    tok_sorted = token_flat[order]
    gw_sorted = gw_flat[order]

    # Static geometry (lane- / MXU-aligned).
    dim_p = _round_up(dim, 128)
    inter_p = _round_up(inter, 128)
    bm = min(bm, _round_up(nk, 16))                              # small-problem clamp
    bm, tk = _pick_tiles(bm, dim_p, inter_p, vmem_cap)
    capacity = _round_up(nk + n_experts * (bm - 1), bm)          # static upper bound
    n_blocks = capacity // bm                                    # always >= 2 for E >= 2
    n_kchunks = inter_p // tk

    # Per-expert counts -> block-aligned group offsets.
    counts = jnp.zeros((n_experts,), jnp.int32).at[e_sorted].add(1)
    raw_starts = jnp.concatenate(
        [jnp.zeros((1,), jnp.int32), jnp.cumsum(counts)[:-1]])
    padded_counts = ((counts + bm - 1) // bm) * bm
    grp_starts = jnp.concatenate(
        [jnp.zeros((1,), jnp.int32), jnp.cumsum(padded_counts)[:-1]])

    # Destination row of each sorted assignment inside the group-padded slab.
    rank = jnp.arange(nk, dtype=jnp.int32) - raw_starts[e_sorted]
    dest = grp_starts[e_sorted] + rank                           # all < capacity

    # Per-block expert id / validity (scalar-prefetched into SMEM).
    block_cnt = padded_counts // bm                              # (E,)
    block_ends = jnp.cumsum(block_cnt)                           # (E,)
    blk = jnp.arange(n_blocks, dtype=jnp.int32)
    owner = jnp.searchsorted(block_ends, blk, side="right").astype(jnp.int32)
    used = block_ends[-1]
    valid = blk < used
    fill = jnp.take(owner, jnp.maximum(used - 1, 0))             # last real expert
    block_expert = jnp.where(valid, jnp.minimum(owner, n_experts - 1),
                             fill).astype(jnp.int32)
    block_valid = valid.astype(jnp.int32)

    # Group-padded activations (zeros in padding rows / padded feature lanes).
    rows = jnp.zeros((nk, dim_p), jnp.bfloat16).at[:, :dim].set(x_bf[tok_sorted])
    x_grp = jnp.zeros((capacity, dim_p), jnp.bfloat16).at[dest].set(rows)

    # Padded expert weights (bf16) and biases (f32). Exact: zeros add nothing.
    w1_p = jnp.zeros((n_experts, dim_p, inter_p), jnp.bfloat16
                     ).at[:, :dim, :inter].set(w1t.astype(jnp.bfloat16))
    b1_p = jnp.zeros((n_experts, 1, inter_p), jnp.float32).at[:, :, :inter].set(b1)
    w2_p = jnp.zeros((n_experts, inter_p, dim_p), jnp.bfloat16
                     ).at[:, :inter, :dim].set(w2t.astype(jnp.bfloat16))
    b2_p = jnp.zeros((n_experts, 1, dim_p), jnp.float32).at[:, :, :dim].set(b2)

    # ---- Grouped expert FFN (Pallas) ----------------------------------------
    y_grp = pl.pallas_call(
        _gmm_kernel,
        out_shape=jax.ShapeDtypeStruct((capacity, dim_p), jnp.float32),
        grid_spec=pltpu.PrefetchScalarGridSpec(
            num_scalar_prefetch=2,
            grid=(n_blocks, n_kchunks),
            in_specs=[
                # x block: constant across the inner inter-chunk axis.
                pl.BlockSpec((bm, dim_p), lambda i, kc, be, bv: (i, 0)),
                # Expert weights/biases routed by the prefetched block->expert map.
                pl.BlockSpec((pl.Squeezed(), dim_p, tk),
                             lambda i, kc, be, bv: (be[i], 0, kc)),
                pl.BlockSpec((pl.Squeezed(), 1, tk),
                             lambda i, kc, be, bv: (be[i], 0, kc)),
                pl.BlockSpec((pl.Squeezed(), tk, dim_p),
                             lambda i, kc, be, bv: (be[i], kc, 0)),
                pl.BlockSpec((pl.Squeezed(), 1, dim_p),
                             lambda i, kc, be, bv: (be[i], 0, 0)),
            ],
            out_specs=pl.BlockSpec((bm, dim_p), lambda i, kc, be, bv: (i, 0)),
        ),
        compiler_params=pltpu.CompilerParams(
            dimension_semantics=("parallel", "arbitrary"),
            vmem_limit_bytes=vmem_cap),
    )(block_expert, block_valid, x_grp, w1_p, b1_p, w2_p, b2_p)

    # ---- Scatter-add back to token order, applying the routing weights ------
    y_rows = jnp.take(y_grp, dest, axis=0)[:, :dim] * gw_sorted[:, None]
    y = jnp.zeros((n_tok, dim), jnp.float32).at[tok_sorted].add(y_rows)
    return y                                   # (N, dim), like the PyTorch module


# --------------------- Pure-JAX reference (same bf16 casts) -----------------
def moe_reference(x, params, n_activated_experts, route_scale=1.0):
    """Mirrors the PyTorch forward (dropout = identity) with matching casts."""
    gate_wt = params["gate_wt"]
    dim, n_experts = gate_wt.shape
    x2 = x.reshape(-1, dim).astype(jnp.float32)
    n = x2.shape[0]
    xb = x2.astype(jnp.bfloat16)
    logits = jnp.dot(xb, gate_wt.astype(jnp.bfloat16),
                     preferred_element_type=jnp.float32)
    scores = jax.nn.sigmoid(logits)
    top_vals, top_idx = jax.lax.top_k(scores, n_activated_experts)
    weights = top_vals / jnp.sum(top_vals, axis=-1, keepdims=True) * route_scale
    gate_dense = jnp.zeros((n, n_experts), jnp.float32).at[
        jnp.arange(n)[:, None], top_idx].set(weights)
    y = jnp.zeros_like(x2)
    for e in range(n_experts):
        h = jnp.dot(xb, params["w1t"][e].astype(jnp.bfloat16),
                    preferred_element_type=jnp.float32) + params["b1"][e]
        h = jnp.maximum(h, 0.0)
        out = jnp.dot(h.astype(jnp.bfloat16), params["w2t"][e].astype(jnp.bfloat16),
                      preferred_element_type=jnp.float32) + params["b2"][e]
        y = y + out * gate_dense[:, e:e + 1]
    return y


if __name__ == "__main__":
    dim = 32
    n_experts = 4
    n_activated_experts = 2
    moe_inter_dim = 64
    route_scale = 1.0
    batch, seq = 2, 8

    key = jax.random.PRNGKey(0)
    kx, kp = jax.random.split(key)
    x = jax.random.normal(kx, (batch, seq, dim), jnp.float32)
    params = init_moe_params(kp, dim, n_experts, moe_inter_dim)

    y = moe_forward(x, params, n_activated_experts, route_scale)
    y = jax.block_until_ready(y)

    y_ref = moe_reference(x, params, n_activated_experts, route_scale)
    assert y.shape == (batch * seq, dim)
    assert jnp.allclose(y, y_ref, atol=2e-3, rtol=2e-3), "mismatch vs reference"

    print("KERNEL_OK")
</pallas_src>

<mosaic_0001>
module attributes {stable_mosaic.version = 11 : i64} {
  func.func private @main(%arg0: i32) attributes {dimension_semantics = [#tpu.dimension_semantics<core_parallel>], iteration_bounds = array<i64: 2>, tpu.core_type = #tpu.core_type<sc_scalar_subcore>, window_params = []} {
    return
  }
}

module attributes {stable_mosaic.version = 11 : i64} {
  func.func private @main(%arg0: i32) attributes {dimension_semantics = [#tpu.dimension_semantics<core_parallel>], iteration_bounds = array<i64: 2>, tpu.core_type = #tpu.core_type<sc_scalar_subcore>, window_params = []} {
    return
  }
}

module attributes {stable_mosaic.version = 11 : i64} {
  func.func @_gmm_kernel(%arg0: i32, %arg1: i32, %arg2: memref<5xi32, #tpu.memory_space<smem>>, %arg3: memref<5xi32, #tpu.memory_space<smem>>, %arg4: memref<32x128xbf16, #tpu.memory_space<vmem>>, %arg5: memref<1x128x128xbf16, #tpu.memory_space<vmem>>, %arg6: memref<1x1x128xf32, #tpu.memory_space<vmem>>, %arg7: memref<1x128x128xbf16, #tpu.memory_space<vmem>>, %arg8: memref<1x1x128xf32, #tpu.memory_space<vmem>>, %arg9: memref<32x128xf32, #tpu.memory_space<vmem>>) attributes {dimension_semantics = [#tpu.dimension_semantics<parallel>, #tpu.dimension_semantics<arbitrary>], iteration_bounds = array<i64: 5, 1>, scalar_prefetch = 2 : i64, scratch_operands = 0 : i64, tpu.core_type = #tpu.core_type<tc>, window_params = [{transform_indices = @transform_0, window_bounds = array<i64: 32, 128>}, {transform_indices = @transform_1, window_bounds = array<i64: 1, 128, 128>}, {transform_indices = @transform_2, window_bounds = array<i64: 1, 1, 128>}, {transform_indices = @transform_3, window_bounds = array<i64: 1, 128, 128>}, {transform_indices = @transform_4, window_bounds = array<i64: 1, 1, 128>}, {transform_indices = @transform_5, window_bounds = array<i64: 32, 128>}]} {
    %c0_i32 = arith.constant 0 : i32
    %0 = arith.cmpi eq, %arg1, %c0_i32 : i32
    %1 = arith.extui %0 : i1 to i32
    %c0_i32_0 = arith.constant 0 : i32
    %2 = arith.cmpi ne, %1, %c0_i32_0 : i32
    scf.if %2 {
      %cst = arith.constant 0.000000e+00 : f32
      %11 = vector.broadcast %cst : f32 to vector<32x128xf32>
      %c0 = arith.constant 0 : index
      %c0_5 = arith.constant 0 : index
      %12 = vector.load %arg9[%c0, %c0_5] : memref<32x128xf32, #tpu.memory_space<vmem>>, vector<32x128xf32>
      tpu.vector_store %arg9[%c0, %c0_5], %11 {strides = array<i32>} : memref<32x128xf32, #tpu.memory_space<vmem>>, vector<32x128xf32>,
    } else {
    }
    %3 = arith.index_cast %arg0 : i32 to index
    %4 = memref.load %arg3[%3] : memref<5xi32, #tpu.memory_space<smem>>
    %c0_i32_1 = arith.constant 0 : i32
    %5 = arith.cmpi ne, %4, %c0_i32_1 : i32
    %6 = arith.extui %5 : i1 to i32
    %c0_i32_2 = arith.constant 0 : i32
    %7 = arith.cmpi ne, %6, %c0_i32_2 : i32
    scf.if %7 {
      %c0 = arith.constant 0 : index
      %c0_5 = arith.constant 0 : index
      %11 = vector.load %arg4[%c0, %c0_5] : memref<32x128xbf16, #tpu.memory_space<vmem>>, vector<32x128xbf16>
      %c0_6 = arith.constant 0 : index
      %c0_7 = arith.constant 0 : index
      %c0_8 = arith.constant 0 : index
      %12 = vector.load %arg5[%c0_6, %c0_7, %c0_8] : memref<1x128x128xbf16, #tpu.memory_space<vmem>>, vector<1x128x128xbf16>
      %13 = vector.shape_cast %12 : vector<1x128x128xbf16> to vector<128x128xbf16>
      %cst = arith.constant dense<0.000000e+00> : vector<32x128xf32>
      %14 = tpu.matmul %11, %13, %cst {dimension_numbers = #tpu.dot_dimension_numbers<[1], [0], [0], [1], [0, 0, 1, 1], [], []>} : vector<32x128xbf16>, vector<128x128xbf16>, vector<32x128xf32> -> vector<32x128xf32>
      %c0_9 = arith.constant 0 : index
      %c0_10 = arith.constant 0 : index
      %c0_11 = arith.constant 0 : index
      %15 = vector.load %arg6[%c0_9, %c0_10, %c0_11] : memref<1x1x128xf32, #tpu.memory_space<vmem>>, vector<1x1x128xf32>
      %16 = vector.shape_cast %15 : vector<1x1x128xf32> to vector<1x128xf32>
      %17 = vector.broadcast %16 : vector<1x128xf32> to vector<32x128xf32>
      %18 = arith.addf %14, %17 : vector<32x128xf32>
      %cst_12 = arith.constant 0.000000e+00 : f32
      %19 = vector.broadcast %cst_12 : f32 to vector<32x128xf32>
      %20 = arith.maximumf %18, %19 : vector<32x128xf32>
      %c0_13 = arith.constant 0 : index
      %c0_14 = arith.constant 0 : index
      %21 = vector.load %arg9[%c0_13, %c0_14] : memref<32x128xf32, #tpu.memory_space<vmem>>, vector<32x128xf32>
      %22 = arith.truncf %20 : vector<32x128xf32> to vector<32x128xbf16>
      %c0_15 = arith.constant 0 : index
      %c0_16 = arith.constant 0 : index
      %c0_17 = arith.constant 0 : index
      %23 = vector.load %arg7[%c0_15, %c0_16, %c0_17] : memref<1x128x128xbf16, #tpu.memory_space<vmem>>, vector<1x128x128xbf16>
      %24 = vector.shape_cast %23 : vector<1x128x128xbf16> to vector<128x128xbf16>
      %cst_18 = arith.constant dense<0.000000e+00> : vector<32x128xf32>
      %25 = tpu.matmul %22, %24, %cst_18 {dimension_numbers = #tpu.dot_dimension_numbers<[1], [0], [0], [1], [0, 0, 1, 1], [], []>} : vector<32x128xbf16>, vector<128x128xbf16>, vector<32x128xf32> -> vector<32x128xf32>
      %26 = arith.addf %21, %25 : vector<32x128xf32>
      %c0_19 = arith.constant 0 : index
      %c0_20 = arith.constant 0 : index
      %27 = vector.load %arg9[%c0_19, %c0_20] : memref<32x128xf32, #tpu.memory_space<vmem>>, vector<32x128xf32>
      tpu.vector_store %arg9[%c0_19, %c0_20], %26 {strides = array<i32>} : memref<32x128xf32, #tpu.memory_space<vmem>>, vector<32x128xf32>,
    } else {
    }
    %c0_i32_3 = arith.constant 0 : i32
    %8 = arith.cmpi eq, %arg1, %c0_i32_3 : i32
    %9 = arith.extui %8 : i1 to i32
    %c0_i32_4 = arith.constant 0 : i32
    %10 = arith.cmpi ne, %9, %c0_i32_4 : i32
    scf.if %10 {
      %c0 = arith.constant 0 : index
      %c0_5 = arith.constant 0 : index
      %11 = vector.load %arg9[%c0, %c0_5] : memref<32x128xf32, #tpu.memory_space<vmem>>, vector<32x128xf32>
      %c0_6 = arith.constant 0 : index
      %c0_7 = arith.constant 0 : index
      %c0_8 = arith.constant 0 : index
      %12 = vector.load %arg8[%c0_6, %c0_7, %c0_8] : memref<1x1x128xf32, #tpu.memory_space<vmem>>, vector<1x1x128xf32>
      %13 = vector.shape_cast %12 : vector<1x1x128xf32> to vector<1x128xf32>
      %14 = vector.broadcast %13 : vector<1x128xf32> to vector<32x128xf32>
      %15 = arith.addf %11, %14 : vector<32x128xf32>
      %c0_9 = arith.constant 0 : index
      %c0_10 = arith.constant 0 : index
      %16 = vector.load %arg9[%c0_9, %c0_10] : memref<32x128xf32, #tpu.memory_space<vmem>>, vector<32x128xf32>
      tpu.vector_store %arg9[%c0_9, %c0_10], %15 {strides = array<i32>} : memref<32x128xf32, #tpu.memory_space<vmem>>, vector<32x128xf32>,
    } else {
    }
    return
  }
  func.func @transform_0(%arg0: i32, %arg1: i32, %arg2: memref<5xi32, #tpu.memory_space<smem>>, %arg3: memref<5xi32, #tpu.memory_space<smem>>) -> (i32, i32) {
    %c0_i32 = arith.constant 0 : i32
    %c0_i32_0 = arith.constant 0 : i32
    return %arg0, %c0_i32 : i32, i32
  }
  func.func @transform_1(%arg0: i32, %arg1: i32, %arg2: memref<5xi32, #tpu.memory_space<smem>>, %arg3: memref<5xi32, #tpu.memory_space<smem>>) -> (i32, i32, i32) {
    %0 = arith.index_cast %arg0 : i32 to index
    %1 = memref.load %arg2[%0] : memref<5xi32, #tpu.memory_space<smem>>
    %c0_i32 = arith.constant 0 : i32
    %c0_i32_0 = arith.constant 0 : i32
    return %1, %c0_i32, %arg1 : i32, i32, i32
  }
  func.func @transform_2(%arg0: i32, %arg1: i32, %arg2: memref<5xi32, #tpu.memory_space<smem>>, %arg3: memref<5xi32, #tpu.memory_space<smem>>) -> (i32, i32, i32) {
    %0 = arith.index_cast %arg0 : i32 to index
    %1 = memref.load %arg2[%0] : memref<5xi32, #tpu.memory_space<smem>>
    %c0_i32 = arith.constant 0 : i32
    %c0_i32_0 = arith.constant 0 : i32
    return %1, %c0_i32, %arg1 : i32, i32, i32
  }
  func.func @transform_3(%arg0: i32, %arg1: i32, %arg2: memref<5xi32, #tpu.memory_space<smem>>, %arg3: memref<5xi32, #tpu.memory_space<smem>>) -> (i32, i32, i32) {
    %0 = arith.index_cast %arg0 : i32 to index
    %1 = memref.load %arg2[%0] : memref<5xi32, #tpu.memory_space<smem>>
    %c0_i32 = arith.constant 0 : i32
    %c0_i32_0 = arith.constant 0 : i32
    return %1, %arg1, %c0_i32 : i32, i32, i32
  }
  func.func @transform_4(%arg0: i32, %arg1: i32, %arg2: memref<5xi32, #tpu.memory_space<smem>>, %arg3: memref<5xi32, #tpu.memory_space<smem>>) -> (i32, i32, i32) {
    %0 = arith.index_cast %arg0 : i32 to index
    %1 = memref.load %arg2[%0] : memref<5xi32, #tpu.memory_space<smem>>
    %c0_i32 = arith.constant 0 : i32
    %c0_i32_0 = arith.constant 0 : i32
    %c0_i32_1 = arith.constant 0 : i32
    return %1, %c0_i32, %c0_i32_0 : i32, i32, i32
  }
  func.func @transform_5(%arg0: i32, %arg1: i32, %arg2: memref<5xi32, #tpu.memory_space<smem>>, %arg3: memref<5xi32, #tpu.memory_space<smem>>) -> (i32, i32) {
    %c0_i32 = arith.constant 0 : i32
    %c0_i32_0 = arith.constant 0 : i32
    return %arg0, %c0_i32 : i32, i32
  }
}

</mosaic_0001>

<bundles_post_ra>
// kernel: custom-call.1
= control target key start
LH: loop header
LB: loop body
LE: loop exit
PB: predicated region body
PF: predicated region fallthrough
CT: control target
= control target key end

     0   :  { %s6_s0 = inlined_call_operand.vmem [shape: u32[5], index: 0, kind: output, shape index: {}]  }

// kernel: ne.0
= control target key start
LH: loop header
LB: loop body
LE: loop exit
PB: predicated region body
PF: predicated region fallthrough
CT: control target
= control target key end

     0   :  { %s55_s0 = inlined_call_operand.<no memory space> [shape: s32[], index: 0, kind: input, shape index: {}]   ;;  %s56_s1 = inlined_call_operand.hbm [shape: s32[32], index: 1, kind: output, shape index: {}]  }
   0x1   :  { %v2_v0 = vstv %s55_s0 }
   0x2   :  { %3 = vsyncpa [#allocation1], 0  ;;  %4 = vst [vmem:[#allocation0] sm:$0x1] %v2_v0  ;;  %s38_s0 = smov [#allocation0]  }
   0x3   :  { %s9_s8 = sshll.u32 %s38_s0, 4  ;;  %s10_s8 = int_to_ptr.vmem [resolvable:$true] %s9_s8 }
   0x4   :  { %s16_s9 = scalar_lea.vmem %s10_s8, 16  ;;  %s20_s10 = scalar_lea.vmem %s10_s8, 32 }
   0x5   :  { %p17_p0 = scmp.ne.s32.totalorder %s10_s8, %s16_s9  ;;  %p21_p1 = scmp.lt.s32.totalorder %s10_s8, %s10_s8 }
   0x6   :  { %p22_p2 = scmp.lt.s32.totalorder %s20_s10, %s16_s9 }
   0x8   :  { %p23_p3 = por %p22_p2, %p21_p1 }
   0xa   :  { %p24_p4 = pnand %p23_p3, %p17_p0 }
   0xc   :  { %27 = shalt.err (!%p24_p4)
}
   0xd   :  { %12 = dma.vmem_to_hbm [thread:$0]  %s10_s8, 16, %s56_s1, [#allocation1]  }
   0xe   :  { %36 = dma.done.wait [#allocation1], 16  }
   0xf   :  { %37 = vsyncadd [#allocation1], 4294967280 }
  0x10   :  { %14 = vsyncpa [#allocation1], 1 }

// kernel: moe_forward.1
= control target key start
LH: loop header
LB: loop body
LE: loop exit
PB: predicated region body
PF: predicated region fallthrough
CT: control target
= control target key end

     0   :  { %s1168_s0 = inlined_call_operand.vmem [shape: s32[5], index: 0, kind: input, shape index: {}]   ;;  %s1169_s2 = inlined_call_operand.vmem [shape: bf16[160,128], index: 2, kind: input, shape index: {}]   ;;  %s1170_s3 = inlined_call_operand.vmem [shape: bf16[4,128,128], index: 3, kind: input, shape index: {}]   ;;  %s1171_s4 = inlined_call_operand.vmem [shape: f32[4,1,128], index: 4, kind: input, shape index: {}]   ;;  %s1172_s5 = inlined_call_operand.vmem [shape: bf16[4,128,128], index: 5, kind: input, shape index: {}]   ;;  %s1173_s6 = inlined_call_operand.vmem [shape: f32[4,1,128], index: 6, kind: input, shape index: {}]   ;;  %s1174_s7 = inlined_call_operand.vmem [shape: f32[160,128], index: 7, kind: output, shape index: {}]   ;;  %s1175_s1 = inlined_call_operand.vmem [shape: s32[5], index: 1, kind: input, shape index: {}]  }
   0x1   :  { %s12_s26 = sshll.u32 %s1168_s0, 4  ;;  %s16_s29 = sshll.u32 %s1175_s1, 4  ;;  %s13_s26 = int_to_ptr.vmem [resolvable:$true] %s12_s26  ;;  %s17_s29 = int_to_ptr.vmem [resolvable:$true] %s16_s29 }
   0x2   :  { %s954_s30 = scalar_lea.vmem %s13_s26, 16  ;;  %p959_p1 = scmp.lt.s32.totalorder %s13_s26, %s13_s26 }
   0x3   :  { %p955_p0 = scmp.ne.s32.totalorder %s13_s26, %s954_s30  ;;  %p960_p2 = scmp.lt.s32.totalorder %s954_s30, %s954_s30 }
   0x5   :  { %p961_p3 = por %p960_p2, %p959_p1 }
   0x7   :  { %p962_p4 = pnand %p961_p3, %p955_p0 }
   0x9   :  { %965 = shalt.err (!%p962_p4)  }
   0xa   :  { %s1004_s8 = smov [#allocation3]   ;;  %s966_s9 = scalar_lea.vmem %s17_s29, 16 }
   0xb   :  { %15 = dma.vmem_to_smem %s13_s26, 16, %s1004_s8, [#allocation2] }
   0xc   :  { %p967_p5 = scmp.ne.s32.totalorder %s17_s29, %s966_s9  ;;  %p971_p6 = scmp.lt.s32.totalorder %s17_s29, %s17_s29 }
   0xd   :  { %p972_p7 = scmp.lt.s32.totalorder %s966_s9, %s966_s9 }
   0xf   :  { %p973_p8 = por %p972_p7, %p971_p6 }
  0x11   :  { %p974_p9 = pnand %p973_p8, %p967_p5 }
  0x13   :  { %977 = shalt.err (!%p974_p9)  }
  0x14   :  { %s1005_s0 = smov [#allocation4]  }
  0x15   :  { %19 = dma.vmem_to_smem %s17_s29, 16, %s1005_s0, [#allocation2] }
  0x16   :  { %990 = dma.done.wait [#allocation2], 32 }
  0x17   :  { %991 = vsyncadd [#allocation2], 4294967264 }
  0x18   :  { %21 = sfence }
  0x19   :  { %s1053_s1 = smov 0   ;;  %s1055_s10 = smov 0  }
  0x1a   :  { %s1057_s11 = smov 0  }
  0x1b LB: > { %s39_s12 = sadd.s32 1, %s998_s10  ;;  %p815_p10 = scmp.ge.s32.totalorder %s1002_s11, 1  ;;  %s1002_s11 = sphi %s1057_s11, %s27_s11   ;;  %s998_s10 = sphi %s1055_s10, %s1177_s10   ;;  %s994_s1 = sphi %s1053_s1, %s1176_s1  }
  0x1c   : > { %p41_p11 = scmp.ge.s32.totalorder %s39_s12, 5  ;;  %p281_p12 = scmp.lt.s32.totalorder %s1002_s11, 6 }
  0x1e   : > { %s1179_s12 = smov (%p41_p11, %s39_s12), 0  ;;  %p282_p13 = pnand %p815_p10, %p281_p12 }
  0x1f   : > { %s816_s13 = sshll.u32 (!%p282_p13), %s994_s1, 2  ;;  %s345_s14 = sld [smem:[#allocation3 + %s994_s1]] (!%p282_p13) }
  0x20   : > { %285 = sbr.rel (%p282_p13) target bundleno = 503 (0x1f7), region = 40  ;;  %p340_p0 = scmp.lt.s32.totalorder (!%p282_p13), %s816_s13, 19 }
  0x21   : > { %s355_s15 = sld [smem:[#allocation3 + %s994_s1]] (!%p282_p13) }
  0x22   : > { %s363_s16 = sld [smem:[#allocation3 + %s994_s1]] (!%p282_p13) }
  0x23   : > { %s375_s17 = sld [smem:[#allocation3 + %s994_s1]] (!%p282_p13) }
  0x24   : > { %s395_s0 = sld [smem:[#allocation4 + %s994_s1]] (!%p282_p13) }
  0x25   : > { %s1181_s13 = smov (!%p340_p0, %s816_s13), 19  ;;  %p346_p1 = scmp.lt.s32.totalorder %s345_s14, 3  ;;  %v1006_v0 = vmov 0.0  }
  0x26   : > { %s817_s18 = sshll.u32 %s1181_s13, 2  ;;  %s823_s19 = sshll.u32 %s1181_s13, 3 }
  0x27   : > { %s1081_s22 = scalar_lea.vmem %s1169_s2, %s817_s18  ;;  %p356_p2 = scmp.lt.s32.totalorder %s355_s15, 3 }
  0x28   : > { %s1086_s25 = scalar_lea.vmem %s1174_s7, %s823_s19  ;;  %s1183_s14 = smov (!%p346_p1, %s345_s14), 3 }
  0x29   : > { %391 = vst [vmem:[%s1086_s25] sm:$0xff] %v1006_v0  ;;  %392 = vst [vmem:[%s1086_s25 + $0x8] sm:$0xff] %v1006_v0  ;;  %s1185_s15 = smov (!%p356_p2, %s355_s15), 3  ;;  %s847_s26 = sshll.u32 %s1183_s14, 6 }
  0x2a   : > { %393 = vst [vmem:[%s1086_s25 + $0x10] sm:$0xff] %v1006_v0  ;;  %394 = vst [vmem:[%s1086_s25 + $0x18] sm:$0xff] %v1006_v0  ;;  %p365_p3 = scmp.lt.s32.totalorder %s363_s16, 3  ;;  %s1097_s29 = scalar_lea.vmem %s1170_s3, %s847_s26 }
  0x2b   : > { %s361_s9 = scalar_lea.vmem %s1171_s4, %s1185_s15  ;;  %p376_p4 = scmp.lt.s32.totalorder %s375_s17, 3 }
  0x2c   : > { %s1187_s16 = smov (!%p365_p3, %s363_s16), 3  ;;  %p824_p5 = scmp.eq.s32.totalorder %s395_s0, 0 }
  0x2d   : > { %s848_s13 = sshll.u32 %s1187_s16, 6  ;;  %s1189_s17 = smov (!%p376_p4, %s375_s17), 3 }
  0x2e   : > { %s1107_s20 = scalar_lea.vmem %s1172_s5, %s848_s13  ;;  %s378_s23 = scalar_lea.vmem %s1173_s6, %s1189_s17 }
  0x2f   : > { %399 = sbr.rel (%p824_p5) target bundleno = 493 (0x1ed), region = 48 }
  0x34   : > { %v936_v1 = vld [vmem:[%s1097_s29 + $0x38] sm:$0xff]   ;;  %v937_v2 = vld [vmem:[%s1097_s29 + $0x30] sm:$0xff]   ;;  %v938_v3 = vld [vmem:[%s1097_s29 + $0x28] sm:$0xff]  }
  0x35   : > { %869 = vmatprep.subr.bf16.mxu0 %v936_v1  ;;  %v939_v4 = vld [vmem:[%s1097_s29 + $0x20] sm:$0xff]   ;;  %v946_v6 = vld [vmem:[%s1107_s20 + $0x38] sm:$0xff]   ;;  %v947_v7 = vld [vmem:[%s1107_s20 + $0x30] sm:$0xff]  }
  0x36   : > { %870 = vmatpush3.bf16.msra.mxu0 %v936_v1  ;;  %v944_v5 = vld [vmem:[%s1081_s22] sm:$0xff]   ;;  %v940_v8 = vld [vmem:[%s1097_s29 + $0x18] sm:$0xff]   ;;  %889 = vmatprep.subr.bf16.mxu1 %v946_v6  ;;  %v941_v9 = vld [vmem:[%s1097_s29 + $0x10] sm:$0xff]  }
  0x37   : > { %871 = vmatprep.subr.bf16.mxu0 %v937_v2  ;;  %885 = vmatprep.mubr.bf16.mxu0 %v944_v5  ;;  %v948_v10 = vld [vmem:[%s1107_s20 + $0x28] sm:$0xff]   ;;  %v949_v11 = vld [vmem:[%s1107_s20 + $0x20] sm:$0xff]   ;;  %v950_v13 = vld [vmem:[%s1107_s20 + $0x18] sm:$0xff]  }
  0x38   : > { %890 = vmatpush3.bf16.msra.mxu1 %v946_v6  ;;  %v942_v12 = vld [vmem:[%s1097_s29 + $0x8] sm:$0xff]   ;;  %v943_v14 = vld [vmem:[%s1097_s29] sm:$0xff]   ;;  %v951_v16 = vld [vmem:[%s1107_s20 + $0x10] sm:$0xff]  }
  0x39   : > { %891 = vmatprep.subr.bf16.mxu1 %v947_v7  ;;  %v945_v15 = vld [vmem:[%s1081_s22 + $0x8] sm:$0xff]   ;;  %v953_v18 = vld [vmem:[%s1107_s20] sm:$0xff]   ;;  %v542_v34 = vld [vmem:[%s1086_s25 + $0x10] sm:$0xff] }
  0x3a   : > { %872 = vmatpush3.bf16.msra.mxu0 %v937_v2  ;;  %v952_v17 = vld [vmem:[%s1107_s20 + $0x8] sm:$0xff]   ;;  %v825_v21 = vld [vmem:[%s361_s9] ss:$0 sm:$0xff]  ;;  %v543_v39 = vld [vmem:[%s1086_s25 + $0x18] sm:$0xff] }
  0x3b   : > { %873 = vmatprep.subr.bf16.mxu0 %v938_v3  ;;  %v540_v36 = vld [vmem:[%s1086_s25] sm:$0xff]  ;;  %v541_v42 = vld [vmem:[%s1086_s25 + $0x8] sm:$0xff] }
  0x3c   : > { %892 = vmatpush3.bf16.msra.mxu1 %v947_v7 }
  0x3d   : > { %893 = vmatprep.subr.bf16.mxu1 %v948_v10 }
  0x3e   : > { %874 = vmatpush3.bf16.msra.mxu0 %v938_v3 }
  0x3f   : > { %875 = vmatprep.subr.bf16.mxu0 %v939_v4 }
  0x40   : > { %894 = vmatpush3.bf16.msra.mxu1 %v948_v10 }
  0x41   : > { %895 = vmatprep.subr.bf16.mxu1 %v949_v11 }
  0x42   : > { %876 = vmatpush3.bf16.msra.mxu0 %v939_v4 }
  0x43   : > { %877 = vmatprep.subr.bf16.mxu0 %v940_v8 }
  0x44   : > { %896 = vmatpush3.bf16.msra.mxu1 %v949_v11 }
  0x45   : > { %897 = vmatprep.subr.bf16.mxu1 %v950_v13 }
  0x46   : > { %878 = vmatpush3.bf16.msra.mxu0 %v940_v8 }
  0x47   : > { %879 = vmatprep.subr.bf16.mxu0 %v941_v9 }
  0x48   : > { %898 = vmatpush3.bf16.msra.mxu1 %v950_v13 }
  0x49   : > { %899 = vmatprep.subr.bf16.mxu1 %v951_v16 }
  0x4a   : > { %880 = vmatpush3.bf16.msra.mxu0 %v941_v9 }
  0x4b   : > { %881 = vmatprep.subr.bf16.mxu0 %v942_v12 }
  0x4c   : > { %900 = vmatpush3.bf16.msra.mxu1 %v951_v16 }
  0x4d   : > { %901 = vmatprep.subr.bf16.mxu1 %v952_v17 }
  0x4e   : > { %882 = vmatpush3.bf16.msra.mxu0 %v942_v12 }
  0x4f   : > { %883 = vmatprep.subr.bf16.mxu0 %v943_v14 }
  0x50   : > { %902 = vmatpush3.bf16.msra.mxu1 %v952_v17 }
  0x51   : > { %903 = vmatprep.subr.bf16.mxu1 %v953_v18 }
  0x52   : > { %884 = vmatpush3.bf16.msra.mxu0 %v943_v14 }
  0x54   : > { %904 = vmatpush3.bf16.msra.mxu1 %v953_v18 }
  0x55   : > { %886 = vmatmul.mubr.bf16.vlgmr.msra.gmra.mxu0 %v945_v15 }
 0x115   : > { %v887_v19 = vpop.f32.mrf.mxu0 }
 0x116   : > { %v530_v25 = vadd.f32 %v887_v19, %v825_v21 }
 0x117   : > { %v521_v20 = vpop.f32.mrf.mxu0 }
 0x118   : > { %v522_v23 = vadd.f32 %v825_v21, %v521_v20  ;;  %v538_v31 = vmax.f32 %v530_v25, 0.0 }
 0x119   : > { %v888_v22 = vpop.f32.mrf.mxu0 }
 0x11a   : > { %v533_v24 = vadd.f32 %v888_v22, %v825_v21  ;;  %v536_v29 = vmax.f32 %v522_v23, 0.0 }
 0x11b   : > { %v524_v26 = vpop.f32.mrf.mxu0 }
 0x11c   : > { %v525_v27 = vadd.f32 %v825_v21, %v524_v26  ;;  %v539_v28 = vmax.f32 %v533_v24, 0.0 }
 0x11e   : > { %v537_v30 = vmax.f32 %v525_v27, 0.0  ;;  %v545_v33 = vpack.c.bf16 %v539_v28, %v538_v31 }
 0x120   : > { %v544_v32 = vpack.c.bf16 %v537_v30, %v536_v29 }
 0x122   : > { %905 = vmatprep.mubr.bf16.mxu1 %v544_v32 }
 0x123   : > { %906 = vmatmul.mubr.bf16.vlgmr.msra.gmra.mxu1 %v545_v33 }
 0x1e3   : > { %v907_v35 = vpop.f32.mrf.mxu1 }
 0x1e4   : > { %v661_v37 = vadd.f32 %v907_v35, %v542_v34 }
 0x1e5   : > { %v644_v38 = vpop.f32.mrf.mxu1 }
 0x1e6   : > { %665 = vst [vmem:[%s1086_s25 + $0x10] sm:$0xff] %v661_v37  ;;  %v659_v40 = vadd.f32 %v644_v38, %v540_v36 }
 0x1e7   : > { %v908_v41 = vpop.f32.mrf.mxu1 }
 0x1e8   : > { %663 = vst [vmem:[%s1086_s25] sm:$0xff] %v659_v40  ;;  %v662_v43 = vadd.f32 %v908_v41, %v543_v39 }
 0x1e9   : > { %v647_v44 = vpop.f32.mrf.mxu1 }
 0x1ea   : > { %666 = vst [vmem:[%s1086_s25 + $0x18] sm:$0xff] %v662_v43  ;;  %v660_v45 = vadd.f32 %v647_v44, %v541_v42 }
 0x1ec   : > { %664 = vst [vmem:[%s1086_s25 + $0x8] sm:$0xff] %v660_v45 }
 0x1ed PF: > { %v844_v47 = vld [vmem:[%s378_s23] ss:$0 sm:$0xff]  ;;  %v672_v51 = vld [vmem:[%s1086_s25 + $0x10] sm:$0xff] }
 0x1ee   : > { %v683_v53 = vadd.f32 %v844_v47, %v672_v51 }
 0x1ef   : > { %v670_v46 = vld [vmem:[%s1086_s25] sm:$0xff] }
 0x1f0   : > { %v681_v49 = vadd.f32 %v844_v47, %v670_v46  ;;  %687 = vst [vmem:[%s1086_s25 + $0x10] sm:$0xff] %v683_v53 }
 0x1f1   : > { %v673_v52 = vld [vmem:[%s1086_s25 + $0x18] sm:$0xff] }
 0x1f2   : > { %v684_v54 = vadd.f32 %v844_v47, %v673_v52  ;;  %685 = vst [vmem:[%s1086_s25] sm:$0xff] %v681_v49 }
 0x1f3   : > { %v671_v48 = vld [vmem:[%s1086_s25 + $0x8] sm:$0xff] }
 0x1f4   : > { %v682_v50 = vadd.f32 %v844_v47, %v671_v48  ;;  %688 = vst [vmem:[%s1086_s25 + $0x18] sm:$0xff] %v684_v54 }
 0x1f6   : > { %686 = vst [vmem:[%s1086_s25 + $0x8] sm:$0xff] %v682_v50 }
 0x1f7 PF: > { %s27_s11 = sadd.s32 1, %s1002_s11   ;;  %s1176_s1 = smov %s998_s10 }
 0x1f8   : > { %p24_p6 = scmp.ge.s32.totalorder %s27_s11, 7   ;;  %s1177_s10 = smov %s1179_s12 }
 0x1fa   :  { %26 = sbr.rel (!%p24_p6) target bundleno = 27 (0x1b), region = 94 }

</bundles_post_ra>
